<compile_context>
chip_gen: v6e
topology: v6e:2x2x1
jax: 0.10.0
libtpu: 0.0.40
codegen_flags: <defaults>
</compile_context>

<pallas_src>
import jax
import jax.numpy as jnp
from jax import lax
from jax.experimental import pallas as pl
from jax.experimental.pallas import tpu as pltpu


# ----------------------------------------------------------------------------
# VMEM-budgeted, generation-aware tiling helpers
# ----------------------------------------------------------------------------
def _round_up(x, m):
    return (x + m - 1) // m * m


def _vmem_capacity_bytes():
    """Physical VMEM per TensorCore (128 MiB on v5e/v6e, 64 MiB on v7x)."""
    try:
        return int(pltpu.get_tpu_info().vmem_capacity_bytes)
    except Exception:
        return 64 * 1024 * 1024   # assume the smallest generation if the query is unavailable


def _pick_lane_tile(p, bytes_per_lane, step_budget, cap=32768):
    """Largest multiple-of-128 lane tile such that the per-grid-step lane-tiled block set
    (x2 because the Pallas pipeline double-buffers every such block) stays within
    `step_budget` bytes.  The tile need NOT divide p: the grids below use pl.cdiv and let
    Pallas handle the ragged final block, so no host-side padding/slicing is required."""
    budget_tile = (step_budget // max(2 * bytes_per_lane, 1)) // 128 * 128
    tile = min(_round_up(p, 128), cap, budget_tile)
    return max(tile, 128)


# ----------------------------------------------------------------------------
# Pallas kernel 1: conv_s (2x2x2, stride 2, right-pad 1 per spatial dim, no bias)
# as a channel matmul over the im2col'd input, lane-tiled (ragged grid):
#   out tile (s_c, TP) = W_flat (s_c, 8*s_c) @ col tile (8*s_c, TP)
# ----------------------------------------------------------------------------
def _convs_kernel(w_ref, col_ref, o_ref):
    o_ref[0] = jnp.dot(w_ref[...], col_ref[0],
                       preferred_element_type=jnp.float32).astype(o_ref.dtype)


def conv_s_pallas(w_flat, col, *, lane_tile, vmem_limit):
    B, K, Ps = col.shape
    s_c = w_flat.shape[0]
    return pl.pallas_call(
        _convs_kernel,
        out_shape=jax.ShapeDtypeStruct((B, s_c, Ps), jnp.float32),
        grid=(B, pl.cdiv(Ps, lane_tile)),                  # ragged final block: no pad/slice
        in_specs=[pl.BlockSpec((s_c, K), lambda b, j: (0, 0)),            # weight: resident
                  pl.BlockSpec((1, K, lane_tile), lambda b, j: (b, 0, j))],
        out_specs=pl.BlockSpec((1, s_c, lane_tile), lambda b, j: (b, 0, j)),
        compiler_params=pltpu.CompilerParams(
            dimension_semantics=("parallel", "parallel"),
            vmem_limit_bytes=vmem_limit),
    )(w_flat, col)


# ----------------------------------------------------------------------------
# Pallas kernel 2 (fused hot path), lane-tiled ragged grid over flattened spatial P:
#   x    = Wu @ up                              (conv_u matmul)
#   t    = relu(x + s + bu)                     (conv_u bias folded in-kernel)
#   a    = sum_c (A*Wa)[c] * t[c] + shift       (conv_attn 1x1x1 + eval-BN fold; full-
#                                                occupancy VPU mul + XLU sublane reduce)
#   out  = up * sigmoid(a)                      (broadcast over channels)
# ----------------------------------------------------------------------------
def _gate_kernel(shift_ref, wu_ref, coef_ref, up_ref, s_ref, o_ref):
    # shift_ref: SMEM (1,)    = A*(ba - bn_mean) + bn_beta   (conv_attn bias + BN fold)
    # coef_ref : VMEM (s_c,2)   col 0 = bu (conv_u bias),  col 1 = A*Wa (folded attn weights)
    up = up_ref[0]                                                      # (in_c, TP)
    x = jnp.dot(wu_ref[...], up, preferred_element_type=jnp.float32)   # conv_u   (s_c, TP)
    t = jnp.maximum(x + s_ref[0] + coef_ref[:, 0:1], 0.0)              # +bias, ReLU
    a = jnp.sum(t * coef_ref[:, 1:2], axis=0, keepdims=True) + shift_ref[0]   # (1, TP)
    gate = jax.nn.sigmoid(a)
    o_ref[0] = (up * gate).astype(o_ref.dtype)


def gate_pallas(wu, coef, shift, up_flat, s_flat, *, lane_tile, vmem_limit):
    B, in_c, P = up_flat.shape
    s_c = wu.shape[0]
    return pl.pallas_call(
        _gate_kernel,
        out_shape=jax.ShapeDtypeStruct((B, in_c, P), up_flat.dtype),
        grid=(B, pl.cdiv(P, lane_tile)),                   # ragged final block: no pad/slice
        in_specs=[
            pl.BlockSpec(memory_space=pltpu.MemorySpace.SMEM),           # shift scalar
            pl.BlockSpec((s_c, in_c), lambda b, j: (0, 0)),              # Wu: resident
            pl.BlockSpec((s_c, 2), lambda b, j: (0, 0)),                 # [bu | A*Wa]: resident
            pl.BlockSpec((1, in_c, lane_tile), lambda b, j: (b, 0, j)),
            pl.BlockSpec((1, s_c, lane_tile), lambda b, j: (b, 0, j)),
        ],
        out_specs=pl.BlockSpec((1, in_c, lane_tile), lambda b, j: (b, 0, j)),
        compiler_params=pltpu.CompilerParams(
            dimension_semantics=("parallel", "parallel"),
            vmem_limit_bytes=vmem_limit),
    )(shift, wu, coef, up_flat, s_flat)


# ----------------------------------------------------------------------------
# Plain-JAX glue (gather-free)
# ----------------------------------------------------------------------------
def im2col_2x2x2_s2(s):
    """Right-pad only odd spatial dims (exactly the taps the padded ks=2/stride=2 conv
    reads) and express the non-overlapping im2col as a reshape/transpose."""
    # TODO(synk): the transpose still costs one HBM relayout of the skip tensor; fusing it
    # into conv_s_pallas needs in-kernel stride-2 de-interleave loads along lanes/sublanes.
    B, C, Din, Hin, Win = s.shape
    Do, Ho, Wo = (Din + 1) // 2, (Hin + 1) // 2, (Win + 1) // 2
    pads = (2 * Do - Din, 2 * Ho - Hin, 2 * Wo - Win)
    if any(pads):
        s = jnp.pad(s, ((0, 0), (0, 0), (0, pads[0]), (0, pads[1]), (0, pads[2])))
    col = s.reshape(B, C, Do, 2, Ho, 2, Wo, 2)
    col = col.transpose(0, 1, 3, 5, 7, 2, 4, 6)            # (B, C, kd, kh, kw, Do, Ho, Wo)
    return col.reshape(B, C * 8, Do * Ho * Wo), (Do, Ho, Wo)


def _resize_matrix(in_size, out_size):
    """Dense (out, in) linear-interpolation matrix (2 nonzeros/row), align_corners=False
    (PyTorch pixel-center convention incl. clamp-at-0)."""
    if in_size == out_size:
        return None
    scale = in_size / out_size
    dst = jnp.arange(out_size, dtype=jnp.float32)
    src = jnp.maximum((dst + 0.5) * scale - 0.5, 0.0)
    i0 = jnp.clip(jnp.floor(src).astype(jnp.int32), 0, in_size - 1)
    i1 = jnp.minimum(i0 + 1, in_size - 1)
    w1 = src - i0.astype(jnp.float32)
    w0 = 1.0 - w1
    cols = jnp.arange(in_size, dtype=jnp.int32)[None, :]
    return (w0[:, None] * (cols == i0[:, None]).astype(jnp.float32)
            + w1[:, None] * (cols == i1[:, None]).astype(jnp.float32))


def trilinear_resize_matmul(x, size):
    """Separable trilinear resize as three dense matmuls (gather-free, lane-dense).
    HIGHEST precision is retained: the matrices are tiny (2 nonzeros/row) so the extra MXU
    passes are negligible, while DEFAULT's bf16 truncation does not meet the 1e-3 check."""
    # TODO(synk): the real win is fusing the resize into the gate kernel (halo-aware /
    # scalar-prefetched row indexing) so it reads the 8x smaller downsampled skip instead.
    hi = lax.Precision.HIGHEST
    rd = _resize_matrix(x.shape[2], int(size[0]))
    rh = _resize_matrix(x.shape[3], int(size[1]))
    rw = _resize_matrix(x.shape[4], int(size[2]))
    if rd is not None:
        x = jnp.einsum("dk,bckhw->bcdhw", rd, x, precision=hi)
    if rh is not None:
        x = jnp.einsum("hk,bcdkw->bcdhw", rh, x, precision=hi)
    if rw is not None:
        x = jnp.einsum("wk,bcdhk->bcdhw", rw, x, precision=hi)
    return x


def spatial_attention_dual_input(up_in, s, params):
    B, in_c, D, H, W = up_in.shape
    s_c = params["Wu"].shape[0]
    P = D * H * W

    vmem_cap = _vmem_capacity_bytes()
    step_budget = vmem_cap // 8        # per-step lane-block budget (incl. x2 double-buffering)
    vmem_limit = vmem_cap // 4         # scoped limit: 2x headroom over the step budget

    # --- conv_s as a lane-tiled (ragged-grid) Pallas channel matmul over the im2col ---
    col, (Do, Ho, Wo) = im2col_2x2x2_s2(s)                        # (B, 8*s_c, Ps)
    Ps = Do * Ho * Wo
    ws_flat = params["Ws"].reshape(s_c, 8 * s_c)                  # (I,kd,kh,kw) matches col
    tps = _pick_lane_tile(Ps, bytes_per_lane=(8 * s_c + s_c) * 4, step_budget=step_budget)
    s_down = conv_s_pallas(ws_flat, col, lane_tile=tps, vmem_limit=vmem_limit)
    s_down = s_down.reshape(B, s_c, Do, Ho, Wo)

    # --- F.interpolate(conv_s(s), size=x.shape[2:], trilinear) as separable matmuls ---
    s_interp = trilinear_resize_matmul(s_down, (D, H, W)).reshape(B, s_c, P)

    # --- fold eval-BatchNorm3d(1), conv_attn bias and conv_u bias into coef/shift ---
    A = params["bn_gamma"] / jnp.sqrt(params["bn_var"] + params["bn_eps"])
    wa_folded = (A * params["Wa"]).reshape(s_c)                                 # A * Wa
    shift = (A * (params["ba"] - params["bn_mean"]) + params["bn_beta"]).astype(jnp.float32)
    coef = jnp.stack([params["bu"], wa_folded], axis=1).astype(jnp.float32)     # (s_c, 2)

    # --- fused gate kernel over the flattened spatial axis (ragged grid, no padding) ---
    up_flat = up_in.reshape(B, in_c, P)
    tp = _pick_lane_tile(P, bytes_per_lane=(2 * in_c + s_c) * 4, step_budget=step_budget)
    out = gate_pallas(params["Wu"], coef, shift, up_flat, s_interp,
                      lane_tile=tp, vmem_limit=vmem_limit)

    # The second F.interpolate(size=up_in.shape[2:]) is an exact identity: conv_u /
    # conv_attn are 1x1x1 stride-1, so the gate already has up_in's spatial shape.
    return out.reshape(B, in_c, D, H, W)


# ----------------------------------------------------------------------------
# Pure-JAX reference for verification (independent gather-based resize)
# ----------------------------------------------------------------------------
def _resize_axis_gather(x, axis, out_size):
    in_size = x.shape[axis]
    if in_size == out_size:
        return x
    scale = in_size / out_size
    o = jnp.arange(out_size, dtype=jnp.float32)
    src = jnp.maximum((o + 0.5) * scale - 0.5, 0.0)
    i0 = jnp.clip(jnp.floor(src).astype(jnp.int32), 0, in_size - 1)
    i1 = jnp.minimum(i0 + 1, in_size - 1)
    w1 = src - i0.astype(jnp.float32)
    w0 = 1.0 - w1
    x0 = jnp.take(x, i0, axis=axis)
    x1 = jnp.take(x, i1, axis=axis)
    shp = [1] * x.ndim
    shp[axis] = out_size
    return x0 * w0.reshape(shp) + x1 * w1.reshape(shp)


def trilinear_resize_gather(x, size):
    for ax, sz in zip((2, 3, 4), size):
        x = _resize_axis_gather(x, ax, int(sz))
    return x


def reference(up_in, s, p):
    x = jnp.einsum("oi,bidhw->bodhw", p["Wu"], up_in) + p["bu"][None, :, None, None, None]
    sd = lax.conv_general_dilated(
        s, p["Ws"], window_strides=(2, 2, 2),
        padding=((0, 1), (0, 1), (0, 1)),
        dimension_numbers=("NCDHW", "OIDHW", "NCDHW"))
    si = trilinear_resize_gather(sd, x.shape[2:])
    t = jax.nn.relu(x + si)
    a = jnp.einsum("oi,bidhw->bodhw", p["Wa"], t) + p["ba"][None, :, None, None, None]
    a = p["bn_gamma"] * (a - p["bn_mean"]) / jnp.sqrt(p["bn_var"] + p["bn_eps"]) + p["bn_beta"]
    gate = jax.nn.sigmoid(a)
    gate = trilinear_resize_gather(gate, up_in.shape[2:])
    return up_in * gate


if __name__ == "__main__":
    key = jax.random.PRNGKey(0)
    k1, k2, k3, k4, k5, k6 = jax.random.split(key, 6)

    B, in_c, s_c = 2, 8, 4
    D, H, W = 4, 8, 8            # up_in spatial
    Ds, Hs, Wsp = 6, 12, 12      # skip-connection spatial (exercises interpolation)

    up_in = jax.random.normal(k1, (B, in_c, D, H, W), jnp.float32)
    skip = jax.random.normal(k2, (B, s_c, Ds, Hs, Wsp), jnp.float32)

    # Deterministic synthetic parameters (shapes per module __init__).
    params = dict(
        Wu=jax.random.normal(k3, (s_c, in_c), jnp.float32) * 0.3,          # conv_u 1x1x1
        bu=jax.random.normal(k4, (s_c,), jnp.float32) * 0.1,
        Ws=jax.random.normal(k5, (s_c, s_c, 2, 2, 2), jnp.float32) * 0.3,  # conv_s
        Wa=jax.random.normal(k6, (1, s_c), jnp.float32) * 0.3,             # conv_attn 1x1x1
        ba=jnp.array([0.05], jnp.float32),
        bn_gamma=jnp.array([1.3], jnp.float32),                            # BatchNorm3d(1), eval
        bn_beta=jnp.array([0.2], jnp.float32),
        bn_mean=jnp.array([0.1], jnp.float32),
        bn_var=jnp.array([0.8], jnp.float32),
        bn_eps=jnp.float32(1e-5),
    )

    out = jax.jit(spatial_attention_dual_input)(up_in, skip, params)
    out = jax.block_until_ready(out)

    ref = reference(up_in, skip, params)
    assert out.shape == up_in.shape and out.dtype == up_in.dtype
    err = float(jnp.max(jnp.abs(out - ref)))
    assert jnp.allclose(out, ref, rtol=1e-3, atol=1e-3), f"max abs err = {err}"

    print("KERNEL_OK")
</pallas_src>

<mosaic_0001>
module attributes {stable_mosaic.version = 11 : i64} {
  func.func @_convs_kernel(%arg0: i32, %arg1: i32, %arg2: memref<4x32xf32, #tpu.memory_space<vmem>>, %arg3: memref<1x32x128xf32, #tpu.memory_space<vmem>>, %arg4: memref<1x4x128xf32, #tpu.memory_space<vmem>>) attributes {dimension_semantics = [#tpu.dimension_semantics<parallel>, #tpu.dimension_semantics<parallel>], iteration_bounds = array<i64: 2, 1>, scalar_prefetch = 0 : i64, scratch_operands = 0 : i64, tpu.core_type = #tpu.core_type<tc>, window_params = [{pipeline_mode = #tpu.pipeline_mode<synchronous>, transform_indices = @transform_0, window_bounds = array<i64: 4, 32>}, {transform_indices = @transform_1, window_bounds = array<i64: 1, 32, 128>}, {transform_indices = @transform_2, window_bounds = array<i64: 1, 4, 128>}]} {
    %c0 = arith.constant 0 : index
    %c0_0 = arith.constant 0 : index
    %0 = vector.load %arg2[%c0, %c0_0] : memref<4x32xf32, #tpu.memory_space<vmem>>, vector<4x32xf32>
    %c0_1 = arith.constant 0 : index
    %c0_2 = arith.constant 0 : index
    %c0_3 = arith.constant 0 : index
    %1 = vector.load %arg3[%c0_1, %c0_2, %c0_3] : memref<1x32x128xf32, #tpu.memory_space<vmem>>, vector<1x32x128xf32>
    %2 = vector.shape_cast %1 : vector<1x32x128xf32> to vector<32x128xf32>
    %cst = arith.constant dense<0.000000e+00> : vector<4x128xf32>
    %3 = tpu.matmul %0, %2, %cst {dimension_numbers = #tpu.dot_dimension_numbers<[1], [0], [0], [1], [0, 0, 1, 1], [], []>} : vector<4x32xf32>, vector<32x128xf32>, vector<4x128xf32> -> vector<4x128xf32>
    %c0_4 = arith.constant 0 : index
    %c0_5 = arith.constant 0 : index
    %c0_6 = arith.constant 0 : index
    %4 = vector.load %arg4[%c0_4, %c0_5, %c0_6] : memref<1x4x128xf32, #tpu.memory_space<vmem>>, vector<1x4x128xf32>
    %5 = vector.shape_cast %4 : vector<1x4x128xf32> to vector<4x128xf32>
    %6 = vector.shape_cast %3 : vector<4x128xf32> to vector<1x4x128xf32>
    tpu.vector_store %arg4[%c0_4, %c0_5, %c0_6], %6 {strides = array<i32>} : memref<1x4x128xf32, #tpu.memory_space<vmem>>, vector<1x4x128xf32>,
    return
  }
  func.func @transform_0(%arg0: i32, %arg1: i32) -> (i32, i32) {
    %c0_i32 = arith.constant 0 : i32
    %c0_i32_0 = arith.constant 0 : i32
    %c0_i32_1 = arith.constant 0 : i32
    return %c0_i32, %c0_i32_0 : i32, i32
  }
  func.func @transform_1(%arg0: i32, %arg1: i32) -> (i32, i32, i32) {
    %c0_i32 = arith.constant 0 : i32
    %c0_i32_0 = arith.constant 0 : i32
    return %arg0, %c0_i32, %arg1 : i32, i32, i32
  }
  func.func @transform_2(%arg0: i32, %arg1: i32) -> (i32, i32, i32) {
    %c0_i32 = arith.constant 0 : i32
    %c0_i32_0 = arith.constant 0 : i32
    return %arg0, %c0_i32, %arg1 : i32, i32, i32
  }
}

module attributes {stable_mosaic.version = 11 : i64} {
  func.func @_gate_kernel(%arg0: i32, %arg1: i32, %arg2: memref<1xf32, #tpu.memory_space<smem>>, %arg3: memref<4x8xf32, #tpu.memory_space<vmem>>, %arg4: memref<4x2xf32, #tpu.memory_space<vmem>>, %arg5: memref<1x8x256xf32, #tpu.memory_space<vmem>>, %arg6: memref<1x4x256xf32, #tpu.memory_space<vmem>>, %arg7: memref<1x8x256xf32, #tpu.memory_space<vmem>>) attributes {dimension_semantics = [#tpu.dimension_semantics<parallel>, #tpu.dimension_semantics<parallel>], iteration_bounds = array<i64: 2, 1>, scalar_prefetch = 0 : i64, scratch_operands = 0 : i64, tpu.core_type = #tpu.core_type<tc>, window_params = [{transform_indices = @transform_0, window_bounds = array<i64: 1>}, {pipeline_mode = #tpu.pipeline_mode<synchronous>, transform_indices = @transform_1, window_bounds = array<i64: 4, 8>}, {pipeline_mode = #tpu.pipeline_mode<synchronous>, transform_indices = @transform_2, window_bounds = array<i64: 4, 2>}, {transform_indices = @transform_3, window_bounds = array<i64: 1, 8, 256>}, {transform_indices = @transform_4, window_bounds = array<i64: 1, 4, 256>}, {transform_indices = @transform_5, window_bounds = array<i64: 1, 8, 256>}]} {
    %c0 = arith.constant 0 : index
    %c0_0 = arith.constant 0 : index
    %c0_1 = arith.constant 0 : index
    %0 = vector.load %arg5[%c0, %c0_0, %c0_1] : memref<1x8x256xf32, #tpu.memory_space<vmem>>, vector<1x8x256xf32>
    %1 = vector.shape_cast %0 : vector<1x8x256xf32> to vector<8x256xf32>
    %c0_2 = arith.constant 0 : index
    %c0_3 = arith.constant 0 : index
    %2 = vector.load %arg3[%c0_2, %c0_3] : memref<4x8xf32, #tpu.memory_space<vmem>>, vector<4x8xf32>
    %cst = arith.constant dense<0.000000e+00> : vector<4x256xf32>
    %3 = tpu.matmul %2, %1, %cst {dimension_numbers = #tpu.dot_dimension_numbers<[1], [0], [0], [1], [0, 0, 1, 1], [], []>} : vector<4x8xf32>, vector<8x256xf32>, vector<4x256xf32> -> vector<4x256xf32>
    %c0_4 = arith.constant 0 : index
    %c0_5 = arith.constant 0 : index
    %c0_6 = arith.constant 0 : index
    %4 = vector.load %arg6[%c0_4, %c0_5, %c0_6] : memref<1x4x256xf32, #tpu.memory_space<vmem>>, vector<1x4x256xf32>
    %5 = vector.shape_cast %4 : vector<1x4x256xf32> to vector<4x256xf32>
    %6 = arith.addf %3, %5 : vector<4x256xf32>
    %c0_7 = arith.constant 0 : index
    %c0_8 = arith.constant 0 : index
    %7 = vector.load %arg4[%c0_7, %c0_8] : memref<4x2xf32, #tpu.memory_space<vmem>>, vector<4x1xf32>
    %8 = vector.broadcast %7 : vector<4x1xf32> to vector<4x256xf32>
    %9 = arith.addf %6, %8 : vector<4x256xf32>
    %cst_9 = arith.constant 0.000000e+00 : f32
    %10 = vector.broadcast %cst_9 : f32 to vector<4x256xf32>
    %11 = arith.maximumf %9, %10 : vector<4x256xf32>
    %c0_10 = arith.constant 0 : index
    %c1 = arith.constant 1 : index
    %12 = vector.load %arg4[%c0_10, %c1] : memref<4x2xf32, #tpu.memory_space<vmem>>, vector<4x1xf32>
    %13 = vector.broadcast %12 : vector<4x1xf32> to vector<4x256xf32>
    %14 = arith.mulf %11, %13 : vector<4x256xf32>
    %cst_11 = arith.constant dense<0.000000e+00> : vector<256xf32>
    %15 = vector.multi_reduction <add>, %14, %cst_11 [0] : vector<4x256xf32> to vector<256xf32>
    %16 = vector.shape_cast %15 : vector<256xf32> to vector<1x256xf32>
    %c0_12 = arith.constant 0 : index
    %17 = memref.load %arg2[%c0_12] : memref<1xf32, #tpu.memory_space<smem>>
    %18 = vector.broadcast %17 : f32 to vector<1x256xf32>
    %19 = arith.addf %16, %18 : vector<1x256xf32>
    %20 = arith.negf %19 : vector<1x256xf32>
    %21 = math.exp %20 : vector<1x256xf32>
    %cst_13 = arith.constant 1.000000e+00 : f32
    %22 = vector.broadcast %cst_13 : f32 to vector<1x256xf32>
    %23 = arith.addf %22, %21 : vector<1x256xf32>
    %24 = arith.divf %22, %23 : vector<1x256xf32>
    %25 = vector.broadcast %24 : vector<1x256xf32> to vector<8x256xf32>
    %26 = arith.mulf %1, %25 : vector<8x256xf32>
    %c0_14 = arith.constant 0 : index
    %c0_15 = arith.constant 0 : index
    %c0_16 = arith.constant 0 : index
    %27 = vector.load %arg7[%c0_14, %c0_15, %c0_16] : memref<1x8x256xf32, #tpu.memory_space<vmem>>, vector<1x8x256xf32>
    %28 = vector.shape_cast %27 : vector<1x8x256xf32> to vector<8x256xf32>
    %29 = vector.shape_cast %26 : vector<8x256xf32> to vector<1x8x256xf32>
    tpu.vector_store %arg7[%c0_14, %c0_15, %c0_16], %29 {strides = array<i32>} : memref<1x8x256xf32, #tpu.memory_space<vmem>>, vector<1x8x256xf32>,
    return
  }
  func.func @transform_0(%arg0: i32, %arg1: i32) -> i32 {
    %c0_i32 = arith.constant 0 : i32
    %c0_i32_0 = arith.constant 0 : i32
    return %c0_i32 : i32
  }
  func.func @transform_1(%arg0: i32, %arg1: i32) -> (i32, i32) {
    %c0_i32 = arith.constant 0 : i32
    %c0_i32_0 = arith.constant 0 : i32
    %c0_i32_1 = arith.constant 0 : i32
    return %c0_i32, %c0_i32_0 : i32, i32
  }
  func.func @transform_2(%arg0: i32, %arg1: i32) -> (i32, i32) {
    %c0_i32 = arith.constant 0 : i32
    %c0_i32_0 = arith.constant 0 : i32
    %c0_i32_1 = arith.constant 0 : i32
    return %c0_i32, %c0_i32_0 : i32, i32
  }
  func.func @transform_3(%arg0: i32, %arg1: i32) -> (i32, i32, i32) {
    %c0_i32 = arith.constant 0 : i32
    %c0_i32_0 = arith.constant 0 : i32
    return %arg0, %c0_i32, %arg1 : i32, i32, i32
  }
  func.func @transform_4(%arg0: i32, %arg1: i32) -> (i32, i32, i32) {
    %c0_i32 = arith.constant 0 : i32
    %c0_i32_0 = arith.constant 0 : i32
    return %arg0, %c0_i32, %arg1 : i32, i32, i32
  }
  func.func @transform_5(%arg0: i32, %arg1: i32) -> (i32, i32, i32) {
    %c0_i32 = arith.constant 0 : i32
    %c0_i32_0 = arith.constant 0 : i32
    return %arg0, %c0_i32, %arg1 : i32, i32, i32
  }
}

</mosaic_0001>

<bundles_post_ra>
// kernel: spatial_attention_dual_input.2
= control target key start
LH: loop header
LB: loop body
LE: loop exit
PB: predicated region body
PF: predicated region fallthrough
CT: control target
= control target key end

     0   :  { %s425_s9 = smov 0   ;;  %s427_s10 = smov 0   ;;  %s461_s0 = inlined_call_operand.vmem [shape: f32[4,32], index: 0, kind: input, shape index: {}]   ;;  %s462_s1 = inlined_call_operand.vmem [shape: f32[2,32,108], index: 1, kind: input, shape index: {}]   ;;  %s463_s2 = inlined_call_operand.vmem [shape: f32[2,4,108], index: 2, kind: output, shape index: {}]  }
   0x1   :  { %s429_s11 = smov 0  }
   0x2 LB: > { %s24_s12 = sadd.s32 1, %s402_s10  ;;  %p334_p0 = scmp.ge.s32.totalorder %s406_s11, 1  ;;  %s406_s11 = sphi %s429_s11, %s12_s11   ;;  %s402_s10 = sphi %s427_s10, %s465_s10   ;;  %s398_s9 = sphi %s425_s9, %s464_s9  }
   0x3   : > { %p26_p1 = scmp.ge.s32.totalorder %s24_s12, 2  ;;  %p131_p2 = scmp.lt.s32.totalorder %s406_s11, 3 }
   0x5   : > { %s467_s12 = smov (%p26_p1, %s24_s12), 0  ;;  %p132_p3 = pnand %p334_p0, %p131_p2 }
   0x6   : > { %p158_p4 = scmp.lt.s32.totalorder (!%p132_p3), %s398_s9, 1 }
   0x7   : > { %135 = sbr.rel (%p132_p3) target bundleno = 218 (0xda), region = 28 }
   0xc   : > { %v408_v0 = vmov 0.0   ;;  %vm409_vm0 = vmmov 0   ;;  %s469_s9 = smov (!%p158_p4, %s398_s9), 1  ;;  %v173_v5 = vld [vmem:[%s461_s0] sm:$0xf]  ;;  %vm178_vm1 = vcmask 261120  }
   0xd   : > { %347 = vmatprep.subr.mxu0 %v408_v0  ;;  %355 = vmatprep.mubr.msk.f32.mxu0 %vm409_vm0, %v408_v0  ;;  %s341_s13 = sshll.u32 %s469_s9, 5  ;;  %s337_s19 = sshll.u32 %s469_s9, 2 }
   0xe   : > { %s165_s16 = scalar_lea.vmem %s462_s1, %s341_s13  ;;  %s172_s22 = scalar_lea.vmem %s463_s2, %s337_s19 }
   0xf   : > { %v177_v1 = vld [vmem:[%s165_s16 + $0x18] sm:$0xff]  ;;  %v176_v2 = vld [vmem:[%s165_s16 + $0x10] sm:$0xff]  ;;  %v175_v3 = vld [vmem:[%s165_s16 + $0x8] sm:$0xff] }
  0x10   : > { %348 = vmatpush3.msra.mxu0 %v177_v1  ;;  %v174_v4 = vld [vmem:[%s165_s16] sm:$0xff] }
  0x11   : > { %349 = vmatprep.subr.mxu0 %v408_v0 }
  0x12   : > { %350 = vmatpush3.msra.mxu0 %v176_v2 }
  0x13   : > { %351 = vmatprep.subr.mxu0 %v408_v0 }
  0x14   : > { %352 = vmatpush3.msra.mxu0 %v175_v3 }
  0x15   : > { %353 = vmatprep.subr.mxu0 %v408_v0 }
  0x16   : > { %354 = vmatpush3.msra.mxu0 %v174_v4 }
  0x17   : > { %356 = vmatmul.mubr.msk.f32.vlgmr.msra.gmra.mxu0 %vm178_vm1, %v173_v5 }
  0xd7   : > { %v248_v6 = vpop.f32.mrf.mxu0 }
  0xd8   : > { %252 = vst [vmem:[%s172_s22] sm:$0xf] %v248_v6 }
  0xd9   : > { %v357_v7 = vpop.f32.mrf.mxu0 }
  0xda PF: > { %s12_s11 = sadd.s32 1, %s406_s11   ;;  %s464_s9 = smov %s402_s10 }
  0xdb   : > { %p9_p5 = scmp.ge.s32.totalorder %s12_s11, 4   ;;  %s465_s10 = smov %s467_s12 }
  0xdd   :  { %11 = sbr.rel (!%p9_p5) target bundleno = 2 (0x2), region = 58 }

// kernel: spatial_attention_dual_input.3
= control target key start
LH: loop header
LB: loop body
LE: loop exit
PB: predicated region body
PF: predicated region fallthrough
CT: control target
= control target key end

     0   :  { %s656_s20 = smov 0   ;;  %s658_s21 = smov 0   ;;  %s706_s0 = inlined_call_operand.<no memory space> [shape: f32[1], index: 0, kind: input, shape index: {}]   ;;  %s707_s1 = inlined_call_operand.vmem [shape: f32[4,8], index: 1, kind: input, shape index: {}]   ;;  %s708_s2 = inlined_call_operand.vmem [shape: f32[4,2], index: 2, kind: input, shape index: {}]   ;;  %s709_s3 = inlined_call_operand.vmem [shape: f32[2,8,256], index: 3, kind: input, shape index: {}]   ;;  %s710_s4 = inlined_call_operand.vmem [shape: f32[2,4,256], index: 4, kind: input, shape index: {}]   ;;  %s711_s5 = inlined_call_operand.vmem [shape: f32[2,8,256], index: 5, kind: output, shape index: {}]  }
   0x1   :  { %10 = sst [smem:[#allocation2]] %s706_s0  ;;  %s660_s22 = smov 0  }
   0x2 LB: > { %s28_s0 = sadd.s32 1, %s614_s21  ;;  %p543_p0 = scmp.ge.s32.totalorder %s618_s22, 1  ;;  %s618_s22 = sphi %s660_s22, %s16_s22   ;;  %s614_s21 = sphi %s658_s21, %s713_s21   ;;  %s610_s20 = sphi %s656_s20, %s712_s20  }
   0x3   : > { %p30_p1 = scmp.ge.s32.totalorder %s28_s0, 2  ;;  %p226_p2 = scmp.lt.s32.totalorder %s618_s22, 3 }
   0x5   : > { %s715_s0 = smov (%p30_p1, %s28_s0), 0  ;;  %p227_p3 = pnand %p543_p0, %p226_p2 }
   0x6   : > { %p272_p4 = scmp.lt.s32.totalorder (!%p227_p3), %s610_s20, 1  ;;  %s414_s10 = sld [smem:[#allocation2]] (!%p227_p3) }
   0x7   : > { %230 = sbr.rel (%p227_p3) target bundleno = 271 (0x10f), region = 40 }
   0xc   : > { %v620_v0 = vmov 0.0   ;;  %v621_v1 = vmov 0   ;;  %v383_v2 = vld [vmem:[%s708_s2] sm:$0xf]  ;;  %s717_s20 = smov (!%p272_p4, %s610_s20), 1  ;;  %vm308_vm0 = vcmask 64512   ;;  %v415_v32 = vstv %s414_s10 }
   0xd   : > { %376 = vmatprep.mubr.f32.mxu0 %v620_v0  ;;  %585 = vset.pattern.permute.xlu0 %v621_v1  ;;  %s555_s25 = sshll.u32 %s717_s20, 4  ;;  %v303_v5 = vld [vmem:[%s707_s1] sm:$0xf]  ;;  %v622_v6 = vmov 1   ;;  %s556_s6 = sshll.u32 %s717_s20, 3  ;;  %vm399_vm1 = vcmask 1043456  }
   0xe   : > { %386 = vperm.xlu0 %585, %v383_v2   ;;  %s279_s28 = scalar_lea.vmem %s709_s3, %s555_s25  ;;  %s289_s9 = scalar_lea.vmem %s710_s4, %s556_s6 }
   0xf   : > { %v302_v3 = vld [vmem:[%s279_s28 + $0x8] sm:$0xff]  ;;  %v301_v4 = vld [vmem:[%s279_s28] sm:$0xff]  ;;  %s299_s13 = scalar_lea.vmem %s711_s5, %s555_s25 }
  0x10   : > { %342 = vmatprep.subr.mxu0 %v302_v3  ;;  %v304_v7 = vld [vmem:[%s289_s9] sm:$0xff] }
  0x11   : > { %343 = vmatpush1.msra.mxu0 %v301_v4  ;;  %v306_v9 = vcombine.high %v304_v7, %v304_v7 }
  0x12   : > { %586 = vset.pattern.permute.xlu0 %v622_v6  ;;  %550 = vmatmul.mubr.msk.f32.vlgmr.msra.gmra.mxu0 %vm308_vm0, %v303_v5 }
  0x13   : > { %394 = vperm.xlu0 %586, %v383_v2  }
  0x89   : > { %v387_v8 = vpop.permute.xlu0 %386 }
  0x8e   : > { %v395_v15 = vpop.permute.xlu0 %394 }
  0xd2   : > { %v378_v10 = vpop.f32.mrf.mxu0 }
  0xd3   : > { %v379_v11 = vadd.f32 %v378_v10, %v304_v7 }
  0xd4   : > { %v380_v12 = vpop.f32.mrf.mxu0 }
  0xd5   : > { %v389_v13 = vadd.f32 %v387_v8, %v379_v11  ;;  %v381_v14 = vadd.f32 %v380_v12, %v306_v9 }
  0xd7   : > { %v391_v16 = vmax.f32 %v389_v13, 0.0  ;;  %v390_v17 = vadd.f32 %v387_v8, %v381_v14 }
  0xd9   : > { %v392_v18 = vmax.f32 %v390_v17, 0.0  ;;  %v397_v19 = vmul.f32 %v395_v15, %v391_v16 }
  0xdb   : > { %v398_v20 = vmul.f32 %v395_v15, %v392_v18  ;;  %v400_v21 = vsel %vm399_vm1, %v397_v19, 0.0 }
  0xdc   : > { %v401_v22 = vrot.slane %v400_v21, 4 }
  0xdd   : > { %v407_v23 = vsel %vm399_vm1, %v398_v20, 0.0 }
  0xde   : > { %v402_v24 = vadd.f32 %v401_v22, %v400_v21  ;;  %v408_v25 = vrot.slane %v407_v23, 4 }
  0xe0   : > { %v403_v26 = vrot.slane %v402_v24, 2  ;;  %v409_v27 = vadd.f32 %v408_v25, %v407_v23 }
  0xe2   : > { %v404_v28 = vadd.f32 %v403_v26, %v402_v24  ;;  %v410_v29 = vrot.slane %v409_v27, 2 }
  0xe4   : > { %v405_v30 = vrot.slane %v404_v28, 1  ;;  %v411_v31 = vadd.f32 %v410_v29, %v409_v27 }
  0xe6   : > { %v406_v33 = vadd.f32 %v405_v30, %v404_v28  ;;  %v412_v34 = vrot.slane %v411_v31, 1 }
  0xe8   : > { %v413_v35 = vadd.f32 %v412_v34, %v411_v31  ;;  %v416_v36 = vadd.f32 %v415_v32, %v406_v33 }
  0xea   : > { %v417_v37 = vadd.f32 %v415_v32, %v413_v35  ;;  %v551_v38 = vmul.f32 -1.442695, %v416_v36 }
  0xec   : > { %588 = vpow2.f32 %v551_v38  ;;  %v552_v39 = vmul.f32 -1.442695, %v417_v37 }
  0xee   : > { %590 = vpow2.f32 %v552_v39 }
  0xf9   : > { %v589_v40 = vpop.eup %588 }
  0xfa   : > { %v424_v41 = vadd.f32 1.0, %v589_v40 }
  0xfb   : > { %v591_v42 = vpop.eup %590 }
  0xfc   : > { %v425_v43 = vadd.f32 1.0, %v591_v42  ;;  %592 = vrcp.f32 %v424_v41 }
  0xfe   : > { %594 = vrcp.f32 %v425_v43 }
 0x109   : > { %v593_v44 = vpop.eup %592 }
 0x10a   : > { %v430_v45 = vmul.f32 %v593_v44, %v301_v4 }
 0x10b   : > { %v595_v46 = vpop.eup %594 }
 0x10c   : > { %v431_v47 = vmul.f32 %v595_v46, %v302_v3  ;;  %432 = vst [vmem:[%s299_s13] sm:$0xff] %v430_v45 }
 0x10e   : > { %433 = vst [vmem:[%s299_s13 + $0x8] sm:$0xff] %v431_v47 }
 0x10f PF: > { %s16_s22 = sadd.s32 1, %s618_s22   ;;  %s712_s20 = smov %s614_s21 }
 0x110   : > { %p13_p5 = scmp.ge.s32.totalorder %s16_s22, 4   ;;  %s713_s21 = smov %s715_s0 }
 0x112   :  { %15 = sbr.rel (!%p13_p5) target bundleno = 2 (0x2), region = 73 }

</bundles_post_ra>
